<compile_context>
chip_gen: v6e
topology: v6e:2x2x1
jax: 0.10.0
libtpu: 0.0.40
codegen_flags: <defaults>
</compile_context>

<pallas_src>
import functools

import jax
import jax.numpy as jnp
from jax.experimental import pallas as pl
from jax.experimental.pallas import tpu as pltpu


# ----------------------------------------------------------------------------- kernel
def _attention_gate_kernel(g_ref, x_ref, wg_ref, wx_ref, b_ref, wpsi_ref,
                           bpsi_ref, out_ref, *, mxu_conv, mxu_psi, bpsi_smem):
    """sigmoid(psi(relu(Wg·g + Wx·x + b))) * x  on one (C, tile_hw) tile."""
    g = g_ref[...]                                   # (F_g, T)  channels on sublanes
    x = x_ref[...]                                   # (F_l, T)

    if mxu_conv:
        # 1x1 convs (+ folded BN): contract channels on the MXU -> (F_int, T)
        pre = (jnp.dot(wg_ref[...], g, preferred_element_type=jnp.float32)
               + jnp.dot(wx_ref[...], x, preferred_element_type=jnp.float32)
               + b_ref[...])
    else:
        # Tiny contraction (K = F_g + F_l <= 32): VPU broadcast-FMA over channels,
        # avoids MXU push/drain latency on a <10%-utilized systolic array.
        f_g = wg_ref.shape[1]
        f_l = wx_ref.shape[1]
        gf = g.astype(jnp.float32)
        xf = x.astype(jnp.float32)
        wg = wg_ref[...].astype(jnp.float32)         # (F_int, F_g)
        wx = wx_ref[...].astype(jnp.float32)         # (F_int, F_l)
        pre = b_ref[...]                             # (F_int, 1) -> broadcasts
        for c in range(f_g):
            pre = pre + wg[:, c:c + 1] * gf[c:c + 1, :]
        for c in range(f_l):
            pre = pre + wx[:, c:c + 1] * xf[c:c + 1, :]

    p = jnp.maximum(pre, 0.0)                        # (F_int, T)

    if mxu_psi:
        # Large F_int: (1, F_int) x (F_int, T) on the MXU (frees the VALU slot).
        s = jnp.dot(wpsi_ref[...].astype(p.dtype), p,
                    preferred_element_type=jnp.float32)          # (1, T)
    else:
        # Small F_int: VPU multiply + sublane (XLU) reduction.
        s = jnp.sum(p * wpsi_ref[...].astype(jnp.float32), axis=0, keepdims=True)

    bias = bpsi_ref[0] if bpsi_smem else bpsi_ref[...]
    s = jax.nn.sigmoid(s + bias)                     # (1, T)

    # Gate x (broadcast over channel sublanes); lane-dense store.
    out_ref[...] = (x.astype(jnp.float32) * s).astype(out_ref.dtype)


# ----------------------------------------------------------------------------- host helpers
def _fold_bn(w, b, gamma, beta, mean, var, eps=1e-5):
    """Fold eval-mode BatchNorm into a preceding 1x1 conv (w: (Cin, Cout), b: (Cout,))."""
    scale = gamma / jnp.sqrt(var + eps)              # (Cout,)
    w_eff = w * scale[None, :]
    b_eff = (b - mean) * scale + beta
    return w_eff, b_eff


def _vmem_budget_bytes():
    """Generation-aware VMEM budget (~48 MiB on v7x, ~96 MiB on v5e/v6e)."""
    try:
        cap = pltpu.get_tpu_info().vmem_capacity_bytes
    except Exception:
        cap = 64 << 20                               # conservative: v7x per-TC physical
    return min(int(cap * 0.75), 96 << 20)


def _choose_tile_hw(hw, F_g, F_l, F_int, n_batch, itemsize, budget):
    """Spatial (lane-axis) tile: as big as the VMEM budget allows, counting the
    f32 intermediates, preferring divisors of HW, and keeping >= ~4 grid steps
    so a 2-TC chip (v7x) has parallel work."""
    # Resident weights/biases (single-buffered), counted in f32 to be safe.
    weight_bytes = 4 * (F_int * (F_g + F_l) + 3 * F_int + 8)
    # Per-lane bytes: double-buffered g/x/out tiles + live f32 intermediates
    # (pre/p: 2*F_int rows, x-in-f32: F_l rows, s/misc: 2 rows).
    per_lane = 2 * (F_g + 2 * F_l) * itemsize + 4 * (2 * F_int + F_l + 2)
    t_max = max(128, (budget - weight_bytes) // max(per_lane, 1))

    if hw <= min(t_max, 512):
        return hw                                    # tiny maps: single full-extent tile

    # Megacore: ensure n_batch * spatial_steps >= ~4 (but never drop below 512 lanes).
    spatial_steps = max(1, pl.cdiv(4, n_batch))
    mc_cap = max(512, pl.cdiv(pl.cdiv(hw, spatial_steps), 128) * 128)
    t_max = min(t_max, mc_cap)

    if hw <= t_max:
        return hw                                    # full extent always legal

    t_aligned = max(128, (t_max // 128) * 128)
    # Prefer a divisor of HW that is a multiple of 128 -> no ragged tail tile.
    t = t_aligned
    while t >= 128:
        if hw % t == 0:
            return t
        t -= 128
    return t_aligned


# ----------------------------------------------------------------------------- entry point
def attention_gate(g_nchw, x_nchw, params, tile_hw=None):
    """g_nchw: (N, F_g, H, W), x_nchw: (N, F_l, H, W) -> (N, F_l, H, W)."""
    N, F_g, H, W = g_nchw.shape
    F_l = x_nchw.shape[1]
    HW = H * W
    act_dtype = x_nchw.dtype
    if g_nchw.dtype != act_dtype:
        g_nchw = g_nchw.astype(act_dtype)

    # Fold the eval-mode BatchNorms into each 1x1 conv.
    wg, bg = _fold_bn(params["wg"], params["bg"], params["g_gamma"],
                      params["g_beta"], params["g_mean"], params["g_var"])
    wx, bx = _fold_bn(params["wx"], params["bx"], params["x_gamma"],
                      params["x_beta"], params["x_mean"], params["x_var"])
    wp, bp = _fold_bn(params["wpsi"], params["bpsi"], params["p_gamma"],
                      params["p_beta"], params["p_mean"], params["p_var"])
    F_int = wg.shape[1]

    # Static compute-path dispatch.
    mxu_conv = (F_g + F_l) > 32
    mxu_psi = F_int >= 256

    # Weight layouts for channels-on-sublanes compute; bf16 inputs -> bf16 weights
    # (native MXU path), biases stay f32.
    wg_t = wg.T.astype(act_dtype)                    # (F_int, F_g)
    wx_t = wx.T.astype(act_dtype)                    # (F_int, F_l)
    b_sum = (bg + bx).reshape(F_int, 1).astype(jnp.float32)
    if mxu_psi:
        wpsi = wp.reshape(1, F_int).astype(jnp.float32)
        wpsi_block = (1, F_int)
    else:
        wpsi = wp.reshape(F_int, 1).astype(jnp.float32)
        wpsi_block = (F_int, 1)
    bpsi = bp.reshape(-1).astype(jnp.float32)        # (1,)

    # NCHW -> (N, C, H*W): pure reshape, no data movement.
    g3d = g_nchw.reshape(N, F_g, HW)
    x3d = x_nchw.reshape(N, F_l, HW)

    itemsize = jnp.dtype(act_dtype).itemsize
    budget = _vmem_budget_bytes()
    if tile_hw is None:
        tile_hw = _choose_tile_hw(HW, F_g, F_l, F_int, N, itemsize, budget)
    grid = (N, pl.cdiv(HW, tile_hw))

    cost = pl.CostEstimate(
        flops=2 * F_int * (F_g + F_l + 1) * N * HW,
        transcendentals=N * HW,
        bytes_accessed=N * HW * (F_g + 2 * F_l) * itemsize
        + 4 * F_int * (F_g + F_l + 3),
    )

    def run(fast):
        def const(shape):
            idx = lambda n, t: (0,) * len(shape)
            if fast:
                # Grid-invariant operand: single buffer (no dead double-buffer VMEM).
                return pl.BlockSpec(shape, idx, pipeline_mode=pl.Buffered(1))
            return pl.BlockSpec(shape, idx)

        if fast:
            bpsi_arr = bpsi                          # (1,) scalar in SMEM
            bpsi_spec = pl.BlockSpec(memory_space=pltpu.MemorySpace.SMEM)
        else:
            bpsi_arr = bpsi.reshape(1, 1)            # (1, 1) in VMEM
            bpsi_spec = pl.BlockSpec((1, 1), lambda n, t: (0, 0))

        kernel = functools.partial(_attention_gate_kernel,
                                   mxu_conv=mxu_conv, mxu_psi=mxu_psi,
                                   bpsi_smem=fast)

        return pl.pallas_call(
            kernel,
            out_shape=jax.ShapeDtypeStruct((N, F_l, HW), act_dtype),
            grid_spec=pltpu.PrefetchScalarGridSpec(
                num_scalar_prefetch=0,
                grid=grid,
                in_specs=[
                    pl.BlockSpec((None, F_g, tile_hw), lambda n, t: (n, 0, t)),  # g tile
                    pl.BlockSpec((None, F_l, tile_hw), lambda n, t: (n, 0, t)),  # x tile
                    const((F_int, F_g)),             # Wg^T (BN folded)
                    const((F_int, F_l)),             # Wx^T (BN folded)
                    const((F_int, 1)),               # bg + bx
                    const(wpsi_block),               # Wpsi (BN folded)
                    bpsi_spec,                       # bpsi scalar
                ],
                out_specs=pl.BlockSpec((None, F_l, tile_hw), lambda n, t: (n, 0, t)),
            ),
            compiler_params=pltpu.CompilerParams(
                dimension_semantics=("parallel", "parallel"),
                vmem_limit_bytes=budget),
            cost_estimate=cost if fast else None,
        )(g3d, x3d, wg_t, wx_t, b_sum, wpsi, bpsi_arr)

    try:
        out3d = run(fast=True)
    except Exception:
        # Graceful degradation if Buffered(1)/SMEM-input/cost-hint are unsupported
        # on the installed JAX: identical numerics, plain double-buffered specs.
        out3d = run(fast=False)

    # (N, C, H*W) -> NCHW: pure reshape, no data movement.
    return out3d.reshape(N, F_l, H, W)


# ----------------------------------------------------------------------------- test harness
def _init_params(key, F_g, F_l, F_int):
    ks = jax.random.split(key, 6)
    return {
        # conv weights stored as (Cin, Cout); biases (Cout,)
        "wg": jax.random.normal(ks[0], (F_g, F_int), jnp.float32) * 0.1,
        "bg": jax.random.normal(ks[1], (F_int,), jnp.float32) * 0.1,
        "wx": jax.random.normal(ks[2], (F_l, F_int), jnp.float32) * 0.1,
        "bx": jax.random.normal(ks[3], (F_int,), jnp.float32) * 0.1,
        "wpsi": jax.random.normal(ks[4], (F_int, 1), jnp.float32) * 0.1,
        "bpsi": jax.random.normal(ks[5], (1,), jnp.float32) * 0.1,
        # BatchNorm (eval-mode) affine + running stats, deterministic values
        "g_gamma": jnp.linspace(0.9, 1.1, F_int, dtype=jnp.float32),
        "g_beta": jnp.linspace(-0.05, 0.05, F_int, dtype=jnp.float32),
        "g_mean": jnp.linspace(-0.1, 0.1, F_int, dtype=jnp.float32),
        "g_var": jnp.linspace(0.8, 1.2, F_int, dtype=jnp.float32),
        "x_gamma": jnp.linspace(1.1, 0.9, F_int, dtype=jnp.float32),
        "x_beta": jnp.linspace(0.05, -0.05, F_int, dtype=jnp.float32),
        "x_mean": jnp.linspace(0.1, -0.1, F_int, dtype=jnp.float32),
        "x_var": jnp.linspace(1.2, 0.8, F_int, dtype=jnp.float32),
        "p_gamma": jnp.array([1.05], jnp.float32),
        "p_beta": jnp.array([0.02], jnp.float32),
        "p_mean": jnp.array([0.01], jnp.float32),
        "p_var": jnp.array([0.95], jnp.float32),
    }


def _reference(g, x, params):
    """Pure-JAX (f32) reference of the same eval-mode forward, in NCHW."""
    g = g.astype(jnp.float32)
    x = x.astype(jnp.float32)

    def conv1x1_bn(z, w, b, gamma, beta, mean, var, eps=1e-5):
        y = jnp.einsum("nchw,cd->ndhw", z, w) + b[None, :, None, None]
        scale = gamma / jnp.sqrt(var + eps)
        return (y - mean[None, :, None, None]) * scale[None, :, None, None] \
            + beta[None, :, None, None]

    g1 = conv1x1_bn(g, params["wg"], params["bg"], params["g_gamma"],
                    params["g_beta"], params["g_mean"], params["g_var"])
    x1 = conv1x1_bn(x, params["wx"], params["bx"], params["x_gamma"],
                    params["x_beta"], params["x_mean"], params["x_var"])
    p = jnp.maximum(g1 + x1, 0.0)
    psi = conv1x1_bn(p, params["wpsi"], params["bpsi"], params["p_gamma"],
                     params["p_beta"], params["p_mean"], params["p_var"])
    return x * jax.nn.sigmoid(psi)


if __name__ == "__main__":
    key = jax.random.PRNGKey(0)
    H, W = 16, 16

    # Case 1: tiny channels (VPU conv path), f32, strict check.
    N, F_g, F_l, F_int = 2, 4, 4, 8
    kg, kx, kp, key = jax.random.split(key, 4)
    g = jax.random.normal(kg, (N, F_g, H, W), jnp.float32)
    x = jax.random.normal(kx, (N, F_l, H, W), jnp.float32)
    params = _init_params(kp, F_g, F_l, F_int)

    out = jax.block_until_ready(attention_gate(g, x, params))
    ref = _reference(g, x, params)
    assert out.shape == (N, F_l, H, W)
    err = float(jnp.max(jnp.abs(out - ref)))
    assert err < 1e-4, err

    # Case 2: larger channels (MXU conv path) with bf16 I/O, loose check.
    N2, F_g2, F_l2, F_int2 = 1, 48, 48, 32
    kg2, kx2, kp2, key = jax.random.split(key, 4)
    g2 = jax.random.normal(kg2, (N2, F_g2, H, W), jnp.float32)
    x2 = jax.random.normal(kx2, (N2, F_l2, H, W), jnp.float32)
    params2 = _init_params(kp2, F_g2, F_l2, F_int2)

    out2 = jax.block_until_ready(
        attention_gate(g2.astype(jnp.bfloat16), x2.astype(jnp.bfloat16), params2))
    ref2 = _reference(g2, x2, params2)
    assert out2.shape == (N2, F_l2, H, W)
    err2 = float(jnp.max(jnp.abs(out2.astype(jnp.float32) - ref2)))
    assert err2 < 0.15, err2

    print("KERNEL_OK")
</pallas_src>

<mosaic_0001>
module attributes {stable_mosaic.version = 11 : i64} {
  func.func @_attention_gate_kernel(%arg0: i32, %arg1: i32, %arg2: memref<1x4x256xf32, #tpu.memory_space<vmem>>, %arg3: memref<1x4x256xf32, #tpu.memory_space<vmem>>, %arg4: memref<8x4xf32, #tpu.memory_space<vmem>>, %arg5: memref<8x4xf32, #tpu.memory_space<vmem>>, %arg6: memref<8x1xf32, #tpu.memory_space<vmem>>, %arg7: memref<8x1xf32, #tpu.memory_space<vmem>>, %arg8: memref<1xf32, #tpu.memory_space<smem>>, %arg9: memref<1x4x256xf32, #tpu.memory_space<vmem>>) attributes {dimension_semantics = [#tpu.dimension_semantics<parallel>, #tpu.dimension_semantics<parallel>], iteration_bounds = array<i64: 2, 1>, scalar_prefetch = 0 : i64, scratch_operands = 0 : i64, tpu.core_type = #tpu.core_type<tc>, window_params = [{transform_indices = @transform_0, window_bounds = array<i64: 1, 4, 256>}, {transform_indices = @transform_1, window_bounds = array<i64: 1, 4, 256>}, {pipeline_mode = #tpu.pipeline_mode<synchronous>, transform_indices = @transform_2, window_bounds = array<i64: 8, 4>}, {pipeline_mode = #tpu.pipeline_mode<synchronous>, transform_indices = @transform_3, window_bounds = array<i64: 8, 4>}, {pipeline_mode = #tpu.pipeline_mode<synchronous>, transform_indices = @transform_4, window_bounds = array<i64: 8, 1>}, {pipeline_mode = #tpu.pipeline_mode<synchronous>, transform_indices = @transform_5, window_bounds = array<i64: 8, 1>}, {transform_indices = @transform_6, window_bounds = array<i64: 1>}, {transform_indices = @transform_7, window_bounds = array<i64: 1, 4, 256>}]} {
    %c0 = arith.constant 0 : index
    %c0_0 = arith.constant 0 : index
    %c0_1 = arith.constant 0 : index
    %0 = vector.load %arg2[%c0, %c0_0, %c0_1] : memref<1x4x256xf32, #tpu.memory_space<vmem>>, vector<1x4x256xf32>
    %1 = vector.shape_cast %0 : vector<1x4x256xf32> to vector<4x256xf32>
    %c0_2 = arith.constant 0 : index
    %c0_3 = arith.constant 0 : index
    %c0_4 = arith.constant 0 : index
    %2 = vector.load %arg3[%c0_2, %c0_3, %c0_4] : memref<1x4x256xf32, #tpu.memory_space<vmem>>, vector<1x4x256xf32>
    %3 = vector.shape_cast %2 : vector<1x4x256xf32> to vector<4x256xf32>
    %c0_5 = arith.constant 0 : index
    %c0_6 = arith.constant 0 : index
    %4 = vector.load %arg4[%c0_5, %c0_6] : memref<8x4xf32, #tpu.memory_space<vmem>>, vector<8x4xf32>
    %c0_7 = arith.constant 0 : index
    %c0_8 = arith.constant 0 : index
    %5 = vector.load %arg5[%c0_7, %c0_8] : memref<8x4xf32, #tpu.memory_space<vmem>>, vector<8x4xf32>
    %c0_9 = arith.constant 0 : index
    %c0_10 = arith.constant 0 : index
    %6 = vector.load %arg6[%c0_9, %c0_10] : memref<8x1xf32, #tpu.memory_space<vmem>>, vector<8x1xf32>
    %7 = vector.extract_strided_slice %4 {offsets = [0, 0], sizes = [8, 1], strides = [1, 1]} : vector<8x4xf32> to vector<8x1xf32>
    %8 = vector.extract_strided_slice %1 {offsets = [0, 0], sizes = [1, 256], strides = [1, 1]} : vector<4x256xf32> to vector<1x256xf32>
    %9 = vector.broadcast %7 : vector<8x1xf32> to vector<8x256xf32>
    %10 = vector.broadcast %8 : vector<1x256xf32> to vector<8x256xf32>
    %11 = arith.mulf %9, %10 : vector<8x256xf32>
    %12 = vector.broadcast %6 : vector<8x1xf32> to vector<8x256xf32>
    %13 = arith.addf %12, %11 : vector<8x256xf32>
    %14 = vector.extract_strided_slice %4 {offsets = [0, 1], sizes = [8, 1], strides = [1, 1]} : vector<8x4xf32> to vector<8x1xf32>
    %15 = vector.extract_strided_slice %1 {offsets = [1, 0], sizes = [1, 256], strides = [1, 1]} : vector<4x256xf32> to vector<1x256xf32>
    %16 = vector.broadcast %14 : vector<8x1xf32> to vector<8x256xf32>
    %17 = vector.broadcast %15 : vector<1x256xf32> to vector<8x256xf32>
    %18 = arith.mulf %16, %17 : vector<8x256xf32>
    %19 = arith.addf %13, %18 : vector<8x256xf32>
    %20 = vector.extract_strided_slice %4 {offsets = [0, 2], sizes = [8, 1], strides = [1, 1]} : vector<8x4xf32> to vector<8x1xf32>
    %21 = vector.extract_strided_slice %1 {offsets = [2, 0], sizes = [1, 256], strides = [1, 1]} : vector<4x256xf32> to vector<1x256xf32>
    %22 = vector.broadcast %20 : vector<8x1xf32> to vector<8x256xf32>
    %23 = vector.broadcast %21 : vector<1x256xf32> to vector<8x256xf32>
    %24 = arith.mulf %22, %23 : vector<8x256xf32>
    %25 = arith.addf %19, %24 : vector<8x256xf32>
    %26 = vector.extract_strided_slice %4 {offsets = [0, 3], sizes = [8, 1], strides = [1, 1]} : vector<8x4xf32> to vector<8x1xf32>
    %27 = vector.extract_strided_slice %1 {offsets = [3, 0], sizes = [1, 256], strides = [1, 1]} : vector<4x256xf32> to vector<1x256xf32>
    %28 = vector.broadcast %26 : vector<8x1xf32> to vector<8x256xf32>
    %29 = vector.broadcast %27 : vector<1x256xf32> to vector<8x256xf32>
    %30 = arith.mulf %28, %29 : vector<8x256xf32>
    %31 = arith.addf %25, %30 : vector<8x256xf32>
    %32 = vector.extract_strided_slice %5 {offsets = [0, 0], sizes = [8, 1], strides = [1, 1]} : vector<8x4xf32> to vector<8x1xf32>
    %33 = vector.extract_strided_slice %3 {offsets = [0, 0], sizes = [1, 256], strides = [1, 1]} : vector<4x256xf32> to vector<1x256xf32>
    %34 = vector.broadcast %32 : vector<8x1xf32> to vector<8x256xf32>
    %35 = vector.broadcast %33 : vector<1x256xf32> to vector<8x256xf32>
    %36 = arith.mulf %34, %35 : vector<8x256xf32>
    %37 = arith.addf %31, %36 : vector<8x256xf32>
    %38 = vector.extract_strided_slice %5 {offsets = [0, 1], sizes = [8, 1], strides = [1, 1]} : vector<8x4xf32> to vector<8x1xf32>
    %39 = vector.extract_strided_slice %3 {offsets = [1, 0], sizes = [1, 256], strides = [1, 1]} : vector<4x256xf32> to vector<1x256xf32>
    %40 = vector.broadcast %38 : vector<8x1xf32> to vector<8x256xf32>
    %41 = vector.broadcast %39 : vector<1x256xf32> to vector<8x256xf32>
    %42 = arith.mulf %40, %41 : vector<8x256xf32>
    %43 = arith.addf %37, %42 : vector<8x256xf32>
    %44 = vector.extract_strided_slice %5 {offsets = [0, 2], sizes = [8, 1], strides = [1, 1]} : vector<8x4xf32> to vector<8x1xf32>
    %45 = vector.extract_strided_slice %3 {offsets = [2, 0], sizes = [1, 256], strides = [1, 1]} : vector<4x256xf32> to vector<1x256xf32>
    %46 = vector.broadcast %44 : vector<8x1xf32> to vector<8x256xf32>
    %47 = vector.broadcast %45 : vector<1x256xf32> to vector<8x256xf32>
    %48 = arith.mulf %46, %47 : vector<8x256xf32>
    %49 = arith.addf %43, %48 : vector<8x256xf32>
    %50 = vector.extract_strided_slice %5 {offsets = [0, 3], sizes = [8, 1], strides = [1, 1]} : vector<8x4xf32> to vector<8x1xf32>
    %51 = vector.extract_strided_slice %3 {offsets = [3, 0], sizes = [1, 256], strides = [1, 1]} : vector<4x256xf32> to vector<1x256xf32>
    %52 = vector.broadcast %50 : vector<8x1xf32> to vector<8x256xf32>
    %53 = vector.broadcast %51 : vector<1x256xf32> to vector<8x256xf32>
    %54 = arith.mulf %52, %53 : vector<8x256xf32>
    %55 = arith.addf %49, %54 : vector<8x256xf32>
    %cst = arith.constant 0.000000e+00 : f32
    %56 = vector.broadcast %cst : f32 to vector<8x256xf32>
    %57 = arith.maximumf %55, %56 : vector<8x256xf32>
    %c0_11 = arith.constant 0 : index
    %c0_12 = arith.constant 0 : index
    %58 = vector.load %arg7[%c0_11, %c0_12] : memref<8x1xf32, #tpu.memory_space<vmem>>, vector<8x1xf32>
    %59 = vector.broadcast %58 : vector<8x1xf32> to vector<8x256xf32>
    %60 = arith.mulf %57, %59 : vector<8x256xf32>
    %cst_13 = arith.constant dense<0.000000e+00> : vector<256xf32>
    %61 = vector.multi_reduction <add>, %60, %cst_13 [0] : vector<8x256xf32> to vector<256xf32>
    %62 = vector.shape_cast %61 : vector<256xf32> to vector<1x256xf32>
    %c0_14 = arith.constant 0 : index
    %63 = memref.load %arg8[%c0_14] : memref<1xf32, #tpu.memory_space<smem>>
    %64 = vector.broadcast %63 : f32 to vector<1x256xf32>
    %65 = arith.addf %62, %64 : vector<1x256xf32>
    %66 = arith.negf %65 : vector<1x256xf32>
    %67 = math.exp %66 : vector<1x256xf32>
    %cst_15 = arith.constant 1.000000e+00 : f32
    %68 = vector.broadcast %cst_15 : f32 to vector<1x256xf32>
    %69 = arith.addf %68, %67 : vector<1x256xf32>
    %70 = arith.divf %68, %69 : vector<1x256xf32>
    %71 = vector.broadcast %70 : vector<1x256xf32> to vector<4x256xf32>
    %72 = arith.mulf %3, %71 : vector<4x256xf32>
    %c0_16 = arith.constant 0 : index
    %c0_17 = arith.constant 0 : index
    %c0_18 = arith.constant 0 : index
    %73 = vector.load %arg9[%c0_16, %c0_17, %c0_18] : memref<1x4x256xf32, #tpu.memory_space<vmem>>, vector<1x4x256xf32>
    %74 = vector.shape_cast %73 : vector<1x4x256xf32> to vector<4x256xf32>
    %75 = vector.shape_cast %72 : vector<4x256xf32> to vector<1x4x256xf32>
    tpu.vector_store %arg9[%c0_16, %c0_17, %c0_18], %75 {strides = array<i32>} : memref<1x4x256xf32, #tpu.memory_space<vmem>>, vector<1x4x256xf32>,
    return
  }
  func.func @transform_0(%arg0: i32, %arg1: i32) -> (i32, i32, i32) {
    %c0_i32 = arith.constant 0 : i32
    %c0_i32_0 = arith.constant 0 : i32
    return %arg0, %c0_i32, %arg1 : i32, i32, i32
  }
  func.func @transform_1(%arg0: i32, %arg1: i32) -> (i32, i32, i32) {
    %c0_i32 = arith.constant 0 : i32
    %c0_i32_0 = arith.constant 0 : i32
    return %arg0, %c0_i32, %arg1 : i32, i32, i32
  }
  func.func @transform_2(%arg0: i32, %arg1: i32) -> (i32, i32) {
    %c0_i32 = arith.constant 0 : i32
    %c0_i32_0 = arith.constant 0 : i32
    %c0_i32_1 = arith.constant 0 : i32
    return %c0_i32, %c0_i32_0 : i32, i32
  }
  func.func @transform_3(%arg0: i32, %arg1: i32) -> (i32, i32) {
    %c0_i32 = arith.constant 0 : i32
    %c0_i32_0 = arith.constant 0 : i32
    %c0_i32_1 = arith.constant 0 : i32
    return %c0_i32, %c0_i32_0 : i32, i32
  }
  func.func @transform_4(%arg0: i32, %arg1: i32) -> (i32, i32) {
    %c0_i32 = arith.constant 0 : i32
    %c0_i32_0 = arith.constant 0 : i32
    %c0_i32_1 = arith.constant 0 : i32
    return %c0_i32, %c0_i32_0 : i32, i32
  }
  func.func @transform_5(%arg0: i32, %arg1: i32) -> (i32, i32) {
    %c0_i32 = arith.constant 0 : i32
    %c0_i32_0 = arith.constant 0 : i32
    %c0_i32_1 = arith.constant 0 : i32
    return %c0_i32, %c0_i32_0 : i32, i32
  }
  func.func @transform_6(%arg0: i32, %arg1: i32) -> i32 {
    %c0_i32 = arith.constant 0 : i32
    %c0_i32_0 = arith.constant 0 : i32
    return %c0_i32 : i32
  }
  func.func @transform_7(%arg0: i32, %arg1: i32) -> (i32, i32, i32) {
    %c0_i32 = arith.constant 0 : i32
    %c0_i32_0 = arith.constant 0 : i32
    return %arg0, %c0_i32, %arg1 : i32, i32, i32
  }
}

module attributes {stable_mosaic.version = 11 : i64} {
  func.func @_attention_gate_kernel(%arg0: i32, %arg1: i32, %arg2: memref<1x4x256xf32, #tpu.memory_space<vmem>>, %arg3: memref<1x4x256xf32, #tpu.memory_space<vmem>>, %arg4: memref<8x4xf32, #tpu.memory_space<vmem>>, %arg5: memref<8x4xf32, #tpu.memory_space<vmem>>, %arg6: memref<8x1xf32, #tpu.memory_space<vmem>>, %arg7: memref<8x1xf32, #tpu.memory_space<vmem>>, %arg8: memref<1x1xf32, #tpu.memory_space<vmem>>, %arg9: memref<1x4x256xf32, #tpu.memory_space<vmem>>) attributes {dimension_semantics = [#tpu.dimension_semantics<parallel>, #tpu.dimension_semantics<parallel>], iteration_bounds = array<i64: 2, 1>, scalar_prefetch = 0 : i64, scratch_operands = 0 : i64, tpu.core_type = #tpu.core_type<tc>, window_params = [{transform_indices = @transform_0, window_bounds = array<i64: 1, 4, 256>}, {transform_indices = @transform_1, window_bounds = array<i64: 1, 4, 256>}, {pipeline_mode = #tpu.pipeline_mode<synchronous>, transform_indices = @transform_2, window_bounds = array<i64: 8, 4>}, {pipeline_mode = #tpu.pipeline_mode<synchronous>, transform_indices = @transform_3, window_bounds = array<i64: 8, 4>}, {pipeline_mode = #tpu.pipeline_mode<synchronous>, transform_indices = @transform_4, window_bounds = array<i64: 8, 1>}, {pipeline_mode = #tpu.pipeline_mode<synchronous>, transform_indices = @transform_5, window_bounds = array<i64: 8, 1>}, {pipeline_mode = #tpu.pipeline_mode<synchronous>, transform_indices = @transform_6, window_bounds = array<i64: 1, 1>}, {transform_indices = @transform_7, window_bounds = array<i64: 1, 4, 256>}]} {
    %c0 = arith.constant 0 : index
    %c0_0 = arith.constant 0 : index
    %c0_1 = arith.constant 0 : index
    %0 = vector.load %arg2[%c0, %c0_0, %c0_1] : memref<1x4x256xf32, #tpu.memory_space<vmem>>, vector<1x4x256xf32>
    %1 = vector.shape_cast %0 : vector<1x4x256xf32> to vector<4x256xf32>
    %c0_2 = arith.constant 0 : index
    %c0_3 = arith.constant 0 : index
    %c0_4 = arith.constant 0 : index
    %2 = vector.load %arg3[%c0_2, %c0_3, %c0_4] : memref<1x4x256xf32, #tpu.memory_space<vmem>>, vector<1x4x256xf32>
    %3 = vector.shape_cast %2 : vector<1x4x256xf32> to vector<4x256xf32>
    %c0_5 = arith.constant 0 : index
    %c0_6 = arith.constant 0 : index
    %4 = vector.load %arg4[%c0_5, %c0_6] : memref<8x4xf32, #tpu.memory_space<vmem>>, vector<8x4xf32>
    %c0_7 = arith.constant 0 : index
    %c0_8 = arith.constant 0 : index
    %5 = vector.load %arg5[%c0_7, %c0_8] : memref<8x4xf32, #tpu.memory_space<vmem>>, vector<8x4xf32>
    %c0_9 = arith.constant 0 : index
    %c0_10 = arith.constant 0 : index
    %6 = vector.load %arg6[%c0_9, %c0_10] : memref<8x1xf32, #tpu.memory_space<vmem>>, vector<8x1xf32>
    %7 = vector.extract_strided_slice %4 {offsets = [0, 0], sizes = [8, 1], strides = [1, 1]} : vector<8x4xf32> to vector<8x1xf32>
    %8 = vector.extract_strided_slice %1 {offsets = [0, 0], sizes = [1, 256], strides = [1, 1]} : vector<4x256xf32> to vector<1x256xf32>
    %9 = vector.broadcast %7 : vector<8x1xf32> to vector<8x256xf32>
    %10 = vector.broadcast %8 : vector<1x256xf32> to vector<8x256xf32>
    %11 = arith.mulf %9, %10 : vector<8x256xf32>
    %12 = vector.broadcast %6 : vector<8x1xf32> to vector<8x256xf32>
    %13 = arith.addf %12, %11 : vector<8x256xf32>
    %14 = vector.extract_strided_slice %4 {offsets = [0, 1], sizes = [8, 1], strides = [1, 1]} : vector<8x4xf32> to vector<8x1xf32>
    %15 = vector.extract_strided_slice %1 {offsets = [1, 0], sizes = [1, 256], strides = [1, 1]} : vector<4x256xf32> to vector<1x256xf32>
    %16 = vector.broadcast %14 : vector<8x1xf32> to vector<8x256xf32>
    %17 = vector.broadcast %15 : vector<1x256xf32> to vector<8x256xf32>
    %18 = arith.mulf %16, %17 : vector<8x256xf32>
    %19 = arith.addf %13, %18 : vector<8x256xf32>
    %20 = vector.extract_strided_slice %4 {offsets = [0, 2], sizes = [8, 1], strides = [1, 1]} : vector<8x4xf32> to vector<8x1xf32>
    %21 = vector.extract_strided_slice %1 {offsets = [2, 0], sizes = [1, 256], strides = [1, 1]} : vector<4x256xf32> to vector<1x256xf32>
    %22 = vector.broadcast %20 : vector<8x1xf32> to vector<8x256xf32>
    %23 = vector.broadcast %21 : vector<1x256xf32> to vector<8x256xf32>
    %24 = arith.mulf %22, %23 : vector<8x256xf32>
    %25 = arith.addf %19, %24 : vector<8x256xf32>
    %26 = vector.extract_strided_slice %4 {offsets = [0, 3], sizes = [8, 1], strides = [1, 1]} : vector<8x4xf32> to vector<8x1xf32>
    %27 = vector.extract_strided_slice %1 {offsets = [3, 0], sizes = [1, 256], strides = [1, 1]} : vector<4x256xf32> to vector<1x256xf32>
    %28 = vector.broadcast %26 : vector<8x1xf32> to vector<8x256xf32>
    %29 = vector.broadcast %27 : vector<1x256xf32> to vector<8x256xf32>
    %30 = arith.mulf %28, %29 : vector<8x256xf32>
    %31 = arith.addf %25, %30 : vector<8x256xf32>
    %32 = vector.extract_strided_slice %5 {offsets = [0, 0], sizes = [8, 1], strides = [1, 1]} : vector<8x4xf32> to vector<8x1xf32>
    %33 = vector.extract_strided_slice %3 {offsets = [0, 0], sizes = [1, 256], strides = [1, 1]} : vector<4x256xf32> to vector<1x256xf32>
    %34 = vector.broadcast %32 : vector<8x1xf32> to vector<8x256xf32>
    %35 = vector.broadcast %33 : vector<1x256xf32> to vector<8x256xf32>
    %36 = arith.mulf %34, %35 : vector<8x256xf32>
    %37 = arith.addf %31, %36 : vector<8x256xf32>
    %38 = vector.extract_strided_slice %5 {offsets = [0, 1], sizes = [8, 1], strides = [1, 1]} : vector<8x4xf32> to vector<8x1xf32>
    %39 = vector.extract_strided_slice %3 {offsets = [1, 0], sizes = [1, 256], strides = [1, 1]} : vector<4x256xf32> to vector<1x256xf32>
    %40 = vector.broadcast %38 : vector<8x1xf32> to vector<8x256xf32>
    %41 = vector.broadcast %39 : vector<1x256xf32> to vector<8x256xf32>
    %42 = arith.mulf %40, %41 : vector<8x256xf32>
    %43 = arith.addf %37, %42 : vector<8x256xf32>
    %44 = vector.extract_strided_slice %5 {offsets = [0, 2], sizes = [8, 1], strides = [1, 1]} : vector<8x4xf32> to vector<8x1xf32>
    %45 = vector.extract_strided_slice %3 {offsets = [2, 0], sizes = [1, 256], strides = [1, 1]} : vector<4x256xf32> to vector<1x256xf32>
    %46 = vector.broadcast %44 : vector<8x1xf32> to vector<8x256xf32>
    %47 = vector.broadcast %45 : vector<1x256xf32> to vector<8x256xf32>
    %48 = arith.mulf %46, %47 : vector<8x256xf32>
    %49 = arith.addf %43, %48 : vector<8x256xf32>
    %50 = vector.extract_strided_slice %5 {offsets = [0, 3], sizes = [8, 1], strides = [1, 1]} : vector<8x4xf32> to vector<8x1xf32>
    %51 = vector.extract_strided_slice %3 {offsets = [3, 0], sizes = [1, 256], strides = [1, 1]} : vector<4x256xf32> to vector<1x256xf32>
    %52 = vector.broadcast %50 : vector<8x1xf32> to vector<8x256xf32>
    %53 = vector.broadcast %51 : vector<1x256xf32> to vector<8x256xf32>
    %54 = arith.mulf %52, %53 : vector<8x256xf32>
    %55 = arith.addf %49, %54 : vector<8x256xf32>
    %cst = arith.constant 0.000000e+00 : f32
    %56 = vector.broadcast %cst : f32 to vector<8x256xf32>
    %57 = arith.maximumf %55, %56 : vector<8x256xf32>
    %c0_11 = arith.constant 0 : index
    %c0_12 = arith.constant 0 : index
    %58 = vector.load %arg7[%c0_11, %c0_12] : memref<8x1xf32, #tpu.memory_space<vmem>>, vector<8x1xf32>
    %59 = vector.broadcast %58 : vector<8x1xf32> to vector<8x256xf32>
    %60 = arith.mulf %57, %59 : vector<8x256xf32>
    %cst_13 = arith.constant dense<0.000000e+00> : vector<256xf32>
    %61 = vector.multi_reduction <add>, %60, %cst_13 [0] : vector<8x256xf32> to vector<256xf32>
    %62 = vector.shape_cast %61 : vector<256xf32> to vector<1x256xf32>
    %c0_14 = arith.constant 0 : index
    %c0_15 = arith.constant 0 : index
    %63 = vector.load %arg8[%c0_14, %c0_15] : memref<1x1xf32, #tpu.memory_space<vmem>>, vector<1x1xf32>
    %64 = vector.broadcast %63 : vector<1x1xf32> to vector<1x256xf32>
    %65 = arith.addf %62, %64 : vector<1x256xf32>
    %66 = arith.negf %65 : vector<1x256xf32>
    %67 = math.exp %66 : vector<1x256xf32>
    %cst_16 = arith.constant 1.000000e+00 : f32
    %68 = vector.broadcast %cst_16 : f32 to vector<1x256xf32>
    %69 = arith.addf %68, %67 : vector<1x256xf32>
    %70 = arith.divf %68, %69 : vector<1x256xf32>
    %71 = vector.broadcast %70 : vector<1x256xf32> to vector<4x256xf32>
    %72 = arith.mulf %3, %71 : vector<4x256xf32>
    %c0_17 = arith.constant 0 : index
    %c0_18 = arith.constant 0 : index
    %c0_19 = arith.constant 0 : index
    %73 = vector.load %arg9[%c0_17, %c0_18, %c0_19] : memref<1x4x256xf32, #tpu.memory_space<vmem>>, vector<1x4x256xf32>
    %74 = vector.shape_cast %73 : vector<1x4x256xf32> to vector<4x256xf32>
    %75 = vector.shape_cast %72 : vector<4x256xf32> to vector<1x4x256xf32>
    tpu.vector_store %arg9[%c0_17, %c0_18, %c0_19], %75 {strides = array<i32>} : memref<1x4x256xf32, #tpu.memory_space<vmem>>, vector<1x4x256xf32>,
    return
  }
  func.func @transform_0(%arg0: i32, %arg1: i32) -> (i32, i32, i32) {
    %c0_i32 = arith.constant 0 : i32
    %c0_i32_0 = arith.constant 0 : i32
    return %arg0, %c0_i32, %arg1 : i32, i32, i32
  }
  func.func @transform_1(%arg0: i32, %arg1: i32) -> (i32, i32, i32) {
    %c0_i32 = arith.constant 0 : i32
    %c0_i32_0 = arith.constant 0 : i32
    return %arg0, %c0_i32, %arg1 : i32, i32, i32
  }
  func.func @transform_2(%arg0: i32, %arg1: i32) -> (i32, i32) {
    %c0_i32 = arith.constant 0 : i32
    %c0_i32_0 = arith.constant 0 : i32
    %c0_i32_1 = arith.constant 0 : i32
    return %c0_i32, %c0_i32_0 : i32, i32
  }
  func.func @transform_3(%arg0: i32, %arg1: i32) -> (i32, i32) {
    %c0_i32 = arith.constant 0 : i32
    %c0_i32_0 = arith.constant 0 : i32
    %c0_i32_1 = arith.constant 0 : i32
    return %c0_i32, %c0_i32_0 : i32, i32
  }
  func.func @transform_4(%arg0: i32, %arg1: i32) -> (i32, i32) {
    %c0_i32 = arith.constant 0 : i32
    %c0_i32_0 = arith.constant 0 : i32
    %c0_i32_1 = arith.constant 0 : i32
    return %c0_i32, %c0_i32_0 : i32, i32
  }
  func.func @transform_5(%arg0: i32, %arg1: i32) -> (i32, i32) {
    %c0_i32 = arith.constant 0 : i32
    %c0_i32_0 = arith.constant 0 : i32
    %c0_i32_1 = arith.constant 0 : i32
    return %c0_i32, %c0_i32_0 : i32, i32
  }
  func.func @transform_6(%arg0: i32, %arg1: i32) -> (i32, i32) {
    %c0_i32 = arith.constant 0 : i32
    %c0_i32_0 = arith.constant 0 : i32
    %c0_i32_1 = arith.constant 0 : i32
    return %c0_i32, %c0_i32_0 : i32, i32
  }
  func.func @transform_7(%arg0: i32, %arg1: i32) -> (i32, i32, i32) {
    %c0_i32 = arith.constant 0 : i32
    %c0_i32_0 = arith.constant 0 : i32
    return %arg0, %c0_i32, %arg1 : i32, i32, i32
  }
}

</mosaic_0001>

<bundles_post_ra>
// kernel: tpu_custom_call.1
= control target key start
LH: loop header
LB: loop body
LE: loop exit
PB: predicated region body
PF: predicated region fallthrough
CT: control target
= control target key end

     0   :  { %s1104_s0 = inlined_call_operand.vmem [shape: f32[2,4,256], index: 0, kind: input, shape index: {}]   ;;  %s1105_s1 = inlined_call_operand.vmem [shape: f32[2,4,256], index: 1, kind: input, shape index: {}]   ;;  %s1106_s2 = inlined_call_operand.vmem [shape: f32[8,4], index: 2, kind: input, shape index: {}]   ;;  %s1107_s3 = inlined_call_operand.vmem [shape: f32[8,4], index: 3, kind: input, shape index: {}]   ;;  %s1108_s4 = inlined_call_operand.vmem [shape: f32[8,1], index: 4, kind: input, shape index: {}]   ;;  %s1109_s5 = inlined_call_operand.vmem [shape: f32[8,1], index: 5, kind: input, shape index: {}]   ;;  %s1110_s6 = inlined_call_operand.<no memory space> [shape: f32[1], index: 6, kind: input, shape index: {}]   ;;  %s1111_s7 = inlined_call_operand.hbm [shape: f32[2,4,256], index: 7, kind: output, shape index: {}]  }
   0x1   :  { %12 = sst [smem:[#allocation2]] %s1110_s6 }
   0x2   :  { %13 = vsyncpa [#allocation4], 0 }
   0x3   :  { %15 = vsyncpa [#allocation4 + $0x1], 0  ;;  %s945_s26 = smov 0   ;;  %s947_s27 = smov 0  }
   0x4   :  { %s949_s28 = smov 0   ;;  %s951_s29 = smov 0  }
   0x5   :  { %s953_s30 = smov 0   ;;  %s955_s8 = smov 0  }
   0x6 LB: > { %s722_s6 = sadd.s32 4294967295, %s895_s8   ;;  %s723_s9 = sadd.s32 4294967294, %s895_s8   ;;  %s895_s8 = sphi %s955_s8, %s21_s8   ;;  %s891_s30 = sphi %s953_s30, %s1118_s30   ;;  %s887_s29 = sphi %s951_s29, %s1117_s29   ;;  %s883_s28 = sphi %s949_s28, %s1116_s28   ;;  %s879_s27 = sphi %s947_s27, %s1115_s27   ;;  %s875_s26 = sphi %s945_s26, %s1114_s26  }
   0x7   : > { %s33_s10 = sadd.s32 1, %s891_s30  ;;  %s203_s11 = sadd.s32 1, %s883_s28 }
   0x8   : > { %p35_p0 = scmp.ge.s32.totalorder %s33_s10, 2  ;;  %p213_p1 = scmp.ne.s32.totalorder %s883_s28, %s879_s27 }
   0x9   : > { %p214_p2 = scmp.eq.s32.totalorder %s722_s6, 1  ;;  %p219_p3 = scmp.ne.s32.totalorder %s879_s27, %s875_s26 }
   0xa   : > { %s1120_s10 = smov (%p35_p0, %s33_s10), 0  ;;  %p220_p5 = scmp.eq.s32.totalorder %s723_s9, 1 }
   0xb   : > { %p985_p4 = por %p214_p2, %p213_p1  ;;  %s198_s13 = ssub.s32 %s891_s30, %s1120_s10 }
   0xc   : > { %p726_p6 = scmp.ge.s32.totalorder %s895_s8, 1  ;;  %p201_p7 = scmp.eq.s32.totalorder %s198_s13, 0 }
   0xd   : > { %p992_p8 = por %p220_p5, %p219_p3  ;;  %p279_p9 = scmp.lt.s32.totalorder %s895_s8, 3 }
   0xe   : > { %s998_s15 = scalar_select %p201_p7, %s883_s28, %s203_s11  }
   0xf   : > { %p280_p10 = pnand %p726_p6, %p279_p9 }
  0x10   : > { %p325_p11 = scmp.lt.s32.totalorder (!%p280_p10), %s887_s29, 1  ;;  %s589_s18 = sld [smem:[#allocation2]] (!%p280_p10) }
  0x11   : > { %283 = sbr.rel (%p280_p10) target bundleno = 240 (0xf0), region = 48  ;;  %s321_s19 = sand.u32 (!%p280_p10), 1, %s879_s27  }
  0x12   : > { %s727_s20 = sshll.u32 (!%p280_p10), %s321_s19, 3  ;;  %s741_s21 = sshll.u32 (!%p280_p10), %s887_s29, 7 }
  0x13   : > { %s323_s22 = scalar_lea.vmem (!%p280_p10), [#allocation3], %s727_s20  ;;  %s626_s6 = scalar_lea.hbm (!%p280_p10), %s1111_s7, %s741_s21 }
  0x14   : > { %s628_s23 = sshll.u32 (!%p280_p10), %s323_s22, 4  ;;  %s612_s9 = scalar_lea.sflag (!%p280_p10), [#allocation4], %s321_s19  ;;  %s629_s23 = int_to_ptr.vmem [resolvable:$true] %s628_s23 }
  0x15   : > { %s901_s13 = smov (!%p280_p10), [#allocation3]  }
  0x16   : > { %v347_v0 = vld [vmem:[%s1106_s2] sm:$0xff]  ;;  %v897_v1 = vmov 1   ;;  %v898_v2 = vmov 0   ;;  %v899_v4 = vmov 2   ;;  %v900_v6 = vmov 3   ;;  %s326_s24 = scalar_select %p325_p11, %s887_s29, 1 }
  0x17   : > { %802 = vset.pattern.permute.xlu1 %v897_v1  ;;  %801 = vset.pattern.permute.xlu0 %v898_v2  ;;  %v349_v3 = vld [vmem:[%s1108_s4] sm:$0xff]  ;;  %v356_v8 = vlaneseq  ;;  %s823_s16 = sshll.u32 %s901_s13, 4  ;;  %s824_s16 = int_to_ptr.vmem [resolvable:$false] %s823_s16 }
  0x18   : > { %384 = vperm.xlu1 %802, %v347_v0   ;;  %352 = vperm.xlu0 %801, %v347_v0   ;;  %v348_v5 = vld [vmem:[%s1107_s3] sm:$0xff]  ;;  %s739_s25 = sshll.u32 %s326_s24, 3  ;;  %s825_s29 = scalar_lea.vmem %s824_s16, 256 }
  0x19   : > { %v569_v7 = vld [vmem:[%s1109_s5] sm:$0xff]  ;;  %v1014_v9 = vshrl.u32 %v356_v8, 7  ;;  %s332_s11 = scalar_lea.vmem %s1104_s0, %s739_s25  ;;  %s342_s17 = scalar_lea.vmem %s1105_s1, %s739_s25 }
  0x1a   : > { %v345_v12 = vld [vmem:[%s332_s11] sm:$0xff]  ;;  %s819_s11 = scalar_lea.vmem %s629_s23, 128  ;;  %p826_p1 = scmp.lt.s32.totalorder %s629_s23, %s824_s16 }
  0x1b   : > { %v358_v10 = vsub.s32 0, %v1014_v9  ;;  %v362_v11 = vsub.s32 4, %v1014_v9  ;;  %v1022_v13 = vsub.s32 1, %v1014_v9  ;;  %v393_v14 = vsub.s32 5, %v1014_v9  ;;  %v1038_v28 = vld [vmem:[%s342_s17] sm:$0xff]  ;;  %p820_p12 = scmp.ne.s32.totalorder %s629_s23, %s819_s11  ;;  %p827_p2 = scmp.lt.s32.totalorder %s825_s29, %s819_s11 }
  0x1c   : > { %803 = vset.pattern.permute.xlu1 %v899_v4  ;;  %378 = vperm.xlu0 %801, %v349_v3   ;;  %v1026_v17 = vsub.s32 2, %v1014_v9  ;;  %v419_v18 = vsub.s32 6, %v1014_v9  ;;  %v1030_v19 = vsub.s32 3, %v1014_v9  ;;  %v445_v20 = vsub.s32 7, %v1014_v9 }
  0x1d   : > { %410 = vperm.xlu1 %803, %v347_v0   ;;  %v359_v15 = vrot.slane %v345_v12, %v358_v10  ;;  %v363_v16 = vrot.slane %v345_v12, %v362_v11  ;;  %v390_v21 = vrot.slane %v345_v12, %v1022_v13  ;;  %v394_v22 = vrot.slane %v345_v12, %v393_v14  ;;  %p821_p13 = pnand %p820_p12, %p985_p4  ;;  %p828_p3 = por %p827_p2, %p826_p1 }
  0x1e   : > { %v416_v25 = vrot.slane %v345_v12, %v1026_v17  ;;  %v420_v26 = vrot.slane %v345_v12, %v419_v18  ;;  %v442_v30 = vrot.slane %v345_v12, %v1030_v19  ;;  %v446_v31 = vrot.slane %v345_v12, %v445_v20 }
  0x1f   : > { %v369_v23 = vrot.slane %v359_v15, %v358_v10  ;;  %v373_v24 = vrot.slane %v363_v16, %v358_v10  ;;  %v400_v32 = vrot.slane %v390_v21, %v1022_v13  ;;  %v404_v33 = vrot.slane %v394_v22, %v1022_v13  ;;  %p822_p0 = pneg %p821_p13 }
  0x20   : > { %804 = vset.pattern.permute.xlu0 %v900_v6  ;;  %v426_v36 = vrot.slane %v416_v25, %v1026_v17  ;;  %v430_v37 = vrot.slane %v420_v26, %v1026_v17  ;;  %v470_v38 = vrot.slane %v1038_v28, %v358_v10  ;;  %v474_v39 = vrot.slane %v1038_v28, %v362_v11 }
  0x21   : > { %805 = vset.pattern.permute.xlu1 %v898_v2  ;;  %436 = vperm.xlu0 %804, %v347_v0   ;;  %v452_v41 = vrot.slane %v442_v30, %v1030_v19  ;;  %v456_v42 = vrot.slane %v446_v31, %v1030_v19  ;;  %v496_v50 = vrot.slane %v1038_v28, %v1022_v13  ;;  %p829_p5 = pnand %p828_p3, %p822_p0 }
  0x22   : > { %463 = vperm.xlu1 %805, %v348_v5   ;;  %v500_v51 = vrot.slane %v1038_v28, %v393_v14  ;;  %v480_v54 = vrot.slane %v470_v38, %v358_v10  ;;  %v484_v55 = vrot.slane %v474_v39, %v358_v10  ;;  %v522_v56 = vrot.slane %v1038_v28, %v1026_v17 }
  0x23   : > { %v526_v57 = vrot.slane %v1038_v28, %v419_v18  ;;  %v548_v8 = vrot.slane %v1038_v28, %v1030_v19  ;;  %v552_v9 = vrot.slane %v1038_v28, %v445_v20 }
  0x24   : > { %v510_v3 = vrot.slane %v500_v51, %v1022_v13 }
  0x25   : > { %807 = vset.pattern.permute.xlu0 %v899_v4  ;;  %v562_v22 = vrot.slane %v552_v9, %v1030_v19 }
  0x26   : > { %806 = vset.pattern.permute.xlu1 %v897_v1  ;;  %516 = vperm.xlu0 %807, %v348_v5  }
  0x27   : > { %490 = vperm.xlu1 %806, %v348_v5  }
  0x2a   : > { %810 = vset.pattern.permute.xlu0 %v898_v2 }
  0x2b   : > { %808 = vset.pattern.permute.xlu1 %v900_v6  ;;  %v532_v6 = vrot.slane %v522_v56, %v1026_v17 }
  0x2c   : > { %542 = vperm.xlu1 %808, %v348_v5  }
  0x30   : > { %809 = vset.pattern.permute.xlu1 %v898_v2  ;;  %v506_v2 = vrot.slane %v496_v50, %v1022_v13  ;;  %v558_v13 = vrot.slane %v548_v8, %v1030_v19 }
  0x31   : > { %572 = vperm.xlu1 %809, %v569_v7   ;;  %v536_v7 = vrot.slane %v526_v57, %v1026_v17 }
  0x93   : > { %v385_v27 = vpop.permute.xlu1 %384  ;;  %v353_v29 = vpop.permute.xlu0 %352 }
  0x94   : > { %v374_v34 = vmul.f32 %v369_v23, %v353_v29  ;;  %v375_v35 = vmul.f32 %v373_v24, %v353_v29  ;;  %v405_v43 = vmul.f32 %v400_v32, %v385_v27  ;;  %v406_v44 = vmul.f32 %v404_v33, %v385_v27 }
  0x97   : > { %v379_v40 = vpop.permute.xlu0 %378 }
  0x98   : > { %v381_v45 = vadd.f32 %v379_v40, %v374_v34  ;;  %v382_v46 = vadd.f32 %v379_v40, %v375_v35  ;;  %v411_v47 = vpop.permute.xlu1 %410 }
  0x99   : > { %v431_v48 = vmul.f32 %v426_v36, %v411_v47  ;;  %v432_v49 = vmul.f32 %v430_v37, %v411_v47 }
  0x9a   : > { %v407_v52 = vadd.f32 %v405_v43, %v381_v45  ;;  %v408_v53 = vadd.f32 %v406_v44, %v382_v46  ;;  %v590_v45 = vstv %s589_s18 }
  0x9c   : > { %v433_v58 = vadd.f32 %v431_v48, %v407_v52  ;;  %v434_v59 = vadd.f32 %v432_v49, %v408_v53  ;;  %v437_v60 = vpop.permute.xlu0 %436 }
  0x9d   : > { %v457_v61 = vmul.f32 %v452_v41, %v437_v60  ;;  %v458_v62 = vmul.f32 %v456_v42, %v437_v60  ;;  %v464_v63 = vpop.permute.xlu1 %463 }
  0x9e   : > { %v485_v0 = vmul.f32 %v480_v54, %v464_v63  ;;  %v486_v1 = vmul.f32 %v484_v55, %v464_v63 }
  0x9f   : > { %v459_v4 = vadd.f32 %v457_v61, %v433_v58  ;;  %v460_v5 = vadd.f32 %v458_v62, %v434_v59 }
  0xa1   : > { %v517_v10 = vpop.permute.xlu0 %516  ;;  %v487_v11 = vadd.f32 %v485_v0, %v459_v4  ;;  %v488_v12 = vadd.f32 %v486_v1, %v460_v5 }
  0xa2   : > { %v491_v14 = vpop.permute.xlu1 %490  ;;  %v537_v18 = vmul.f32 %v532_v6, %v517_v10  ;;  %v538_v21 = vmul.f32 %v536_v7, %v517_v10 }
  0xa3   : > { %v511_v15 = vmul.f32 %v506_v2, %v491_v14  ;;  %v512_v16 = vmul.f32 %v510_v3, %v491_v14 }
  0xa5   : > { %v513_v23 = vadd.f32 %v511_v15, %v487_v11  ;;  %v514_v24 = vadd.f32 %v512_v16, %v488_v12 }
  0xa7   : > { %v539_v17 = vadd.f32 %v537_v18, %v513_v23  ;;  %v540_v25 = vadd.f32 %v538_v21, %v514_v24  ;;  %v543_v26 = vpop.permute.xlu1 %542 }
  0xa8   : > { %v563_v27 = vmul.f32 %v558_v13, %v543_v26  ;;  %v564_v29 = vmul.f32 %v562_v22, %v543_v26 }
  0xaa   : > { %v565_v20 = vadd.f32 %v563_v27, %v539_v17  ;;  %v566_v30 = vadd.f32 %v564_v29, %v540_v25 }
  0xac   : > { %v573_v31 = vpop.permute.xlu1 %572  ;;  %v567_v32 = vmax.f32 %v565_v20, 0.0  ;;  %v568_v33 = vmax.f32 %v566_v30, 0.0 }
  0xae   : > { %v575_v34 = vmul.f32 %v573_v31, %v567_v32  ;;  %v576_v35 = vmul.f32 %v573_v31, %v568_v33 }
  0xb0   : > { %v577_v36 = vrot.slane %v575_v34, 4  ;;  %v583_v37 = vrot.slane %v576_v35, 4 }
  0xb2   : > { %v578_v38 = vadd.f32 %v577_v36, %v575_v34  ;;  %v584_v39 = vadd.f32 %v583_v37, %v576_v35 }
  0xb4   : > { %v579_v19 = vrot.slane %v578_v38, 2  ;;  %v585_v40 = vrot.slane %v584_v39, 2 }
  0xb6   : > { %v580_v41 = vadd.f32 %v579_v19, %v578_v38  ;;  %v586_v42 = vadd.f32 %v585_v40, %v584_v39 }
  0xb8   : > { %v581_v43 = vrot.slane %v580_v41, 1  ;;  %v587_v44 = vrot.slane %v586_v42, 1 }
  0xba   : > { %v582_v46 = vadd.f32 %v581_v43, %v580_v41  ;;  %v588_v47 = vadd.f32 %v587_v44, %v586_v42 }
  0xbc   : > { %v591_v48 = vadd.f32 %v590_v45, %v582_v46  ;;  %v592_v49 = vadd.f32 %v590_v45, %v588_v47 }
  0xbe   : > { %v732_v50 = vmul.f32 -1.442695, %v591_v48  ;;  %v733_v51 = vmul.f32 -1.442695, %v592_v49 }
  0xc0   : > { %811 = vpow2.f32 %v732_v50 }
  0xc1   : > { %813 = vpow2.f32 %v733_v51 }
  0xcd   : > { %v812_v52 = vpop.eup %811 }
  0xce   : > { %v814_v53 = vpop.eup %813  ;;  %v599_v54 = vadd.f32 1.0, %v812_v52 }
  0xcf   : > { %v600_v55 = vadd.f32 1.0, %v814_v53 }
  0xd0   : > { %815 = vrcp.f32 %v599_v54 }
  0xd1   : > { %817 = vrcp.f32 %v600_v55 }
  0xdd   : > { %v816_v56 = vpop.eup %815 }
  0xde   : > { %v818_v57 = vpop.eup %817 }
  0xdf   : > { %v607_v58 = vcombine.low %v816_v56, %v818_v57 }
  0xe1   : > { %v609_v59 = vmul.f32 %v607_v58, %v1038_v28 }
  0xe3   : > { %610 = vst [vmem:[%s323_s22] sm:$0xff] %v609_v59 }
  0xe4   : > { %832 = shalt.err (!%p829_p5)
}
  0xe5   : > { %s833_s17 = scalar_lea.hbm %s626_s6, 128  ;;  %s837_s20 = scalar_lea.hbm %s1111_s7, 256 }
  0xe6   : > { %p834_p6 = scmp.ne.s32.totalorder %s626_s6, %s833_s17  ;;  %p838_p10 = scmp.lt.s32.totalorder %s626_s6, %s1111_s7 }
  0xe7   : > { %p839_p11 = scmp.lt.s32.totalorder %s837_s20, %s833_s17 }
  0xe8   : > { %p835_p7 = pnand %p834_p6, %p985_p4 }
  0xe9   : > { %p840_p12 = por %p839_p11, %p838_p10 }
  0xea   : > { %p836_p9 = pneg %p835_p7 }
  0xec   : > { %p841_p13 = pnand %p840_p12, %p836_p9 }
  0xee   : > { %844 = shalt.err (!%p841_p13)
}
  0xef   : > { %742 = dma.vmem_to_hbm [thread:$0]  (%p985_p4), %s629_s23, 128, %s626_s6, %s612_s9  }
  0xf0 PF: > { %p748_p0 = scmp.ge.s32.totalorder %s895_s8, 2  ;;  %s640_s24 = sand.u32 1, %s875_s26  }
  0xf1   : > { %s641_s25 = scalar_lea.sflag [#allocation4], %s640_s24 }
  0xf2   : > { %p745_p1 = pnand %p748_p0, %p992_p8 }
  0xf4   : > { %p746_p2 = pneg %p745_p1 }
  0xf6   : > { %870 = dma.done.wait (%p746_p2), %s641_s25, 128  }
  0xf7   : > { %872 = vsyncadd (%p746_p2), %s641_s25, 4294967168  ;;  %s21_s8 = sadd.s32 1, %s895_s8   ;;  %s1114_s26 = smov %s879_s27 }
  0xf8   : > { %p18_p3 = scmp.ge.s32.totalorder %s21_s8, 4   ;;  %s1115_s27 = smov %s883_s28 }
  0xf9   : > { %s1116_s28 = smov %s998_s15  ;;  %s1117_s29 = smov %s891_s30 }
  0xfa   : > { %s1118_s30 = smov %s1120_s10  ;;  %20 = sbr.rel (!%p18_p3) target bundleno = 6 (0x6), region = 86 }
  0xff   :  { %646 = vsyncpa [#allocation4], 1 }
 0x100   :  { %648 = vsyncpa [#allocation4 + $0x1], 1 }

// kernel: tpu_custom_call.1
= control target key start
LH: loop header
LB: loop body
LE: loop exit
PB: predicated region body
PF: predicated region fallthrough
CT: control target
= control target key end

     0   :  { %s1122_s0 = inlined_call_operand.vmem [shape: f32[2,4,256], index: 0, kind: input, shape index: {}]   ;;  %s1123_s1 = inlined_call_operand.vmem [shape: f32[2,4,256], index: 1, kind: input, shape index: {}]   ;;  %s1124_s2 = inlined_call_operand.vmem [shape: f32[8,4], index: 2, kind: input, shape index: {}]   ;;  %s1125_s3 = inlined_call_operand.vmem [shape: f32[8,4], index: 3, kind: input, shape index: {}]   ;;  %s1126_s4 = inlined_call_operand.vmem [shape: f32[8,1], index: 4, kind: input, shape index: {}]   ;;  %s1127_s5 = inlined_call_operand.vmem [shape: f32[8,1], index: 5, kind: input, shape index: {}]   ;;  %s1128_s6 = inlined_call_operand.<no memory space> [shape: f32[1,1], index: 6, kind: input, shape index: {}]   ;;  %s1129_s7 = inlined_call_operand.hbm [shape: f32[2,4,256], index: 7, kind: output, shape index: {}]  }
   0x1   :  { %v12_v0 = vstv %s1128_s6 }
   0x2   :  { %13 = vst [vmem:[#allocation2] sm:$0x1] %v12_v0 }
   0x3   :  { %14 = vsyncpa [#allocation4], 0 }
   0x4   :  { %16 = vsyncpa [#allocation4 + $0x1], 0  ;;  %s954_s26 = smov 0   ;;  %s956_s27 = smov 0  }
   0x5   :  { %s958_s28 = smov 0   ;;  %s960_s29 = smov 0  }
   0x6   :  { %s962_s30 = smov 0   ;;  %s964_s8 = smov 0  }
   0x7 LB: > { %s731_s6 = sadd.s32 4294967295, %s904_s8   ;;  %s732_s9 = sadd.s32 4294967294, %s904_s8   ;;  %s904_s8 = sphi %s964_s8, %s22_s8   ;;  %s900_s30 = sphi %s962_s30, %s1136_s30   ;;  %s896_s29 = sphi %s960_s29, %s1135_s29   ;;  %s892_s28 = sphi %s958_s28, %s1134_s28   ;;  %s888_s27 = sphi %s956_s27, %s1133_s27   ;;  %s884_s26 = sphi %s954_s26, %s1132_s26  }
   0x8   : > { %s34_s10 = sadd.s32 1, %s900_s30  ;;  %s204_s11 = sadd.s32 1, %s892_s28 }
   0x9   : > { %p36_p0 = scmp.ge.s32.totalorder %s34_s10, 2  ;;  %p214_p1 = scmp.ne.s32.totalorder %s892_s28, %s888_s27 }
   0xa   : > { %p215_p2 = scmp.eq.s32.totalorder %s731_s6, 1  ;;  %p220_p3 = scmp.ne.s32.totalorder %s888_s27, %s884_s26 }
   0xb   : > { %s1138_s10 = smov (%p36_p0, %s34_s10), 0  ;;  %p221_p5 = scmp.eq.s32.totalorder %s732_s9, 1 }
   0xc   : > { %p994_p4 = por %p215_p2, %p214_p1  ;;  %s199_s13 = ssub.s32 %s900_s30, %s1138_s10 }
   0xd   : > { %p735_p6 = scmp.ge.s32.totalorder %s904_s8, 1  ;;  %p202_p7 = scmp.eq.s32.totalorder %s199_s13, 0 }
   0xe   : > { %p1001_p8 = por %p221_p5, %p220_p3  ;;  %p280_p9 = scmp.lt.s32.totalorder %s904_s8, 3 }
   0xf   : > { %s1007_s15 = scalar_select %p202_p7, %s892_s28, %s204_s11  }
  0x10   : > { %p281_p10 = pnand %p735_p6, %p280_p9 }
  0x11   : > { %p326_p11 = scmp.lt.s32.totalorder (!%p281_p10), %s896_s29, 1  ;;  %s322_s18 = sand.u32 (!%p281_p10), 1, %s888_s27  }
  0x12   : > { %284 = sbr.rel (%p281_p10) target bundleno = 241 (0xf1), region = 48  ;;  %s736_s19 = sshll.u32 (!%p281_p10), %s322_s18, 3 }
  0x13   : > { %s750_s20 = sshll.u32 (!%p281_p10), %s896_s29, 7  ;;  %s324_s21 = scalar_lea.vmem (!%p281_p10), [#allocation3], %s736_s19 }
  0x14   : > { %s637_s22 = sshll.u32 (!%p281_p10), %s324_s21, 4  ;;  %s621_s6 = scalar_lea.sflag (!%p281_p10), [#allocation4], %s322_s18  ;;  %s638_s22 = int_to_ptr.vmem [resolvable:$true] %s637_s22 }
  0x15   : > { %s828_s9 = scalar_lea.vmem (!%p281_p10), %s638_s22, 128 }
  0x16   : > { %p829_p12 = scmp.ne.s32.totalorder (!%p281_p10), %s638_s22, %s828_s9 }
  0x17   : > { %v348_v1 = vld [vmem:[%s1124_s2] sm:$0xff]  ;;  %v906_v2 = vmov 1   ;;  %v907_v3 = vmov 0   ;;  %v908_v5 = vmov 2   ;;  %v909_v7 = vmov 3   ;;  %s327_s24 = scalar_select %p326_p11, %s896_s29, 1 }
  0x18   : > { %811 = vset.pattern.permute.xlu1 %v906_v2  ;;  %810 = vset.pattern.permute.xlu0 %v907_v3  ;;  %v350_v4 = vld [vmem:[%s1126_s4] sm:$0xff]  ;;  %v357_v10 = vlaneseq  ;;  %p830_p13 = pnand %p829_p12, %p994_p4 }
  0x19   : > { %385 = vperm.xlu1 %811, %v348_v1   ;;  %353 = vperm.xlu0 %810, %v348_v1   ;;  %v349_v6 = vld [vmem:[%s1125_s3] sm:$0xff]  ;;  %s748_s25 = sshll.u32 %s327_s24, 3 }
  0x1a   : > { %v590_v8 = vld [vmem:[#allocation2] sm:$0x1]  ;;  %v1023_v11 = vshrl.u32 %v357_v10, 7  ;;  %s333_s11 = scalar_lea.vmem %s1122_s0, %s748_s25  ;;  %s343_s17 = scalar_lea.vmem %s1123_s1, %s748_s25 }
  0x1b   : > { %v570_v9 = vld [vmem:[%s1127_s5] sm:$0xff]  ;;  %s635_s25 = scalar_lea.hbm %s1129_s7, %s750_s20  ;;  %p831_p0 = pneg %p830_p13 }
  0x1c   : > { %v1029_v12 = vsub.s32 0, %v1023_v11  ;;  %v363_v13 = vsub.s32 4, %v1023_v11  ;;  %v346_v14 = vld [vmem:[%s333_s11] sm:$0xff]  ;;  %v1033_v15 = vsub.s32 1, %v1023_v11  ;;  %v394_v16 = vsub.s32 5, %v1023_v11  ;;  %s910_s11 = smov [#allocation3]  }
  0x1d   : > { %812 = vset.pattern.permute.xlu1 %v908_v5  ;;  %379 = vperm.xlu0 %810, %v350_v4   ;;  %v1038_v19 = vsub.s32 2, %v1023_v11  ;;  %v420_v20 = vsub.s32 6, %v1023_v11  ;;  %v1042_v21 = vsub.s32 3, %v1023_v11  ;;  %v446_v22 = vsub.s32 7, %v1023_v11  ;;  %v1052_v30 = vld [vmem:[%s343_s17] sm:$0xff]  ;;  %s832_s13 = sshll.u32 %s910_s11, 4  ;;  %s833_s13 = int_to_ptr.vmem [resolvable:$false] %s832_s13 }
  0x1e   : > { %411 = vperm.xlu1 %812, %v348_v1   ;;  %v360_v17 = vrot.slane %v346_v14, %v1029_v12  ;;  %v364_v18 = vrot.slane %v346_v14, %v363_v13  ;;  %v391_v23 = vrot.slane %v346_v14, %v1033_v15  ;;  %v395_v24 = vrot.slane %v346_v14, %v394_v16  ;;  %s834_s29 = scalar_lea.vmem %s833_s13, 256  ;;  %p835_p1 = scmp.lt.s32.totalorder %s638_s22, %s833_s13 }
  0x1f   : > { %v417_v27 = vrot.slane %v346_v14, %v1038_v19  ;;  %v421_v28 = vrot.slane %v346_v14, %v420_v20  ;;  %v443_v32 = vrot.slane %v346_v14, %v1042_v21  ;;  %v447_v33 = vrot.slane %v346_v14, %v446_v22  ;;  %p836_p2 = scmp.lt.s32.totalorder %s834_s29, %s828_s9 }
  0x20   : > { %v370_v25 = vrot.slane %v360_v17, %v1029_v12  ;;  %v374_v26 = vrot.slane %v364_v18, %v1029_v12  ;;  %v401_v34 = vrot.slane %v391_v23, %v1033_v15  ;;  %v405_v35 = vrot.slane %v395_v24, %v1033_v15 }
  0x21   : > { %813 = vset.pattern.permute.xlu0 %v909_v7  ;;  %v427_v38 = vrot.slane %v417_v27, %v1038_v19  ;;  %v431_v39 = vrot.slane %v421_v28, %v1038_v19  ;;  %v471_v40 = vrot.slane %v1052_v30, %v1029_v12  ;;  %v475_v41 = vrot.slane %v1052_v30, %v363_v13  ;;  %p837_p3 = por %p836_p2, %p835_p1 }
  0x22   : > { %814 = vset.pattern.permute.xlu1 %v907_v3  ;;  %437 = vperm.xlu0 %813, %v348_v1   ;;  %v453_v43 = vrot.slane %v443_v32, %v1042_v21  ;;  %v457_v44 = vrot.slane %v447_v33, %v1042_v21  ;;  %v497_v52 = vrot.slane %v1052_v30, %v1033_v15 }
  0x23   : > { %464 = vperm.xlu1 %814, %v349_v6   ;;  %v501_v53 = vrot.slane %v1052_v30, %v394_v16  ;;  %v481_v56 = vrot.slane %v471_v40, %v1029_v12  ;;  %v485_v57 = vrot.slane %v475_v41, %v1029_v12  ;;  %v523_v58 = vrot.slane %v1052_v30, %v1038_v19  ;;  %p838_p5 = pnand %p837_p3, %p831_p0 }
  0x24   : > { %v527_v59 = vrot.slane %v1052_v30, %v420_v20  ;;  %v507_v4 = vrot.slane %v497_v52, %v1033_v15  ;;  %v549_v10 = vrot.slane %v1052_v30, %v1042_v21  ;;  %v553_v11 = vrot.slane %v1052_v30, %v446_v22 }
  0x26   : > { %816 = vset.pattern.permute.xlu0 %v908_v5  ;;  %v511_v5 = vrot.slane %v501_v53, %v1033_v15  ;;  %v559_v15 = vrot.slane %v549_v10, %v1042_v21 }
  0x27   : > { %815 = vset.pattern.permute.xlu1 %v906_v2  ;;  %517 = vperm.xlu0 %816, %v349_v6  }
  0x28   : > { %491 = vperm.xlu1 %815, %v349_v6  }
  0x2b   : > { %819 = vset.pattern.permute.xlu0 %v907_v3 }
  0x2c   : > { %817 = vset.pattern.permute.xlu1 %v909_v7  ;;  %593 = vperm.xlu0 %819, %v590_v8   ;;  %v533_v8 = vrot.slane %v523_v58, %v1038_v19 }
  0x2d   : > { %543 = vperm.xlu1 %817, %v349_v6  }
  0x31   : > { %818 = vset.pattern.permute.xlu1 %v907_v3 }
  0x32   : > { %573 = vperm.xlu1 %818, %v570_v9   ;;  %v537_v9 = vrot.slane %v527_v59, %v1038_v19 }
  0x94   : > { %v386_v29 = vpop.permute.xlu1 %385  ;;  %v354_v31 = vpop.permute.xlu0 %353 }
  0x95   : > { %v375_v36 = vmul.f32 %v370_v25, %v354_v31  ;;  %v376_v37 = vmul.f32 %v374_v26, %v354_v31  ;;  %v406_v45 = vmul.f32 %v401_v34, %v386_v29  ;;  %v407_v46 = vmul.f32 %v405_v35, %v386_v29 }
  0x96   : > { %v563_v25 = vrot.slane %v553_v11, %v1042_v21 }
  0x98   : > { %v380_v42 = vpop.permute.xlu0 %379 }
  0x99   : > { %v382_v47 = vadd.f32 %v380_v42, %v375_v36  ;;  %v383_v48 = vadd.f32 %v380_v42, %v376_v37  ;;  %v412_v49 = vpop.permute.xlu1 %411 }
  0x9a   : > { %v432_v50 = vmul.f32 %v427_v38, %v412_v49  ;;  %v433_v51 = vmul.f32 %v431_v39, %v412_v49 }
  0x9b   : > { %v408_v54 = vadd.f32 %v406_v45, %v382_v47  ;;  %v409_v55 = vadd.f32 %v407_v46, %v383_v48 }
  0x9d   : > { %v434_v60 = vadd.f32 %v432_v50, %v408_v54  ;;  %v435_v61 = vadd.f32 %v433_v51, %v409_v55  ;;  %v438_v62 = vpop.permute.xlu0 %437 }
  0x9e   : > { %v458_v63 = vmul.f32 %v453_v43, %v438_v62  ;;  %v459_v0 = vmul.f32 %v457_v44, %v438_v62  ;;  %v465_v1 = vpop.permute.xlu1 %464 }
  0x9f   : > { %v486_v2 = vmul.f32 %v481_v56, %v465_v1  ;;  %v487_v3 = vmul.f32 %v485_v57, %v465_v1 }
  0xa0   : > { %v460_v6 = vadd.f32 %v458_v63, %v434_v60  ;;  %v461_v7 = vadd.f32 %v459_v0, %v435_v61 }
  0xa2   : > { %v518_v13 = vpop.permute.xlu0 %517  ;;  %v488_v14 = vadd.f32 %v486_v2, %v460_v6  ;;  %v489_v16 = vadd.f32 %v487_v3, %v461_v7 }
  0xa3   : > { %v492_v17 = vpop.permute.xlu1 %491  ;;  %v538_v23 = vmul.f32 %v533_v8, %v518_v13  ;;  %v539_v24 = vmul.f32 %v537_v9, %v518_v13 }
  0xa4   : > { %v512_v18 = vmul.f32 %v507_v4, %v492_v17  ;;  %v513_v20 = vmul.f32 %v511_v5, %v492_v17 }
  0xa6   : > { %v514_v26 = vadd.f32 %v512_v18, %v488_v14  ;;  %v515_v27 = vadd.f32 %v513_v20, %v489_v16 }
  0xa7   : > { %v594_v44 = vpop.permute.xlu0 %593 }
  0xa8   : > { %v540_v19 = vadd.f32 %v538_v23, %v514_v26  ;;  %v541_v28 = vadd.f32 %v539_v24, %v515_v27  ;;  %v544_v29 = vpop.permute.xlu1 %543  ;;  %v599_v49 = vrot.slane %v594_v44, %v1029_v12 }
  0xa9   : > { %v564_v31 = vmul.f32 %v559_v15, %v544_v29  ;;  %v565_v32 = vmul.f32 %v563_v25, %v544_v29 }
  0xab   : > { %v566_v22 = vadd.f32 %v564_v31, %v540_v19  ;;  %v567_v33 = vadd.f32 %v565_v32, %v541_v28 }
  0xad   : > { %v574_v34 = vpop.permute.xlu1 %573  ;;  %v568_v35 = vmax.f32 %v566_v22, 0.0  ;;  %v569_v36 = vmax.f32 %v567_v33, 0.0 }
  0xaf   : > { %v576_v37 = vmul.f32 %v574_v34, %v568_v35  ;;  %v577_v38 = vmul.f32 %v574_v34, %v569_v36 }
  0xb1   : > { %v578_v39 = vrot.slane %v576_v37, 4  ;;  %v584_v40 = vrot.slane %v577_v38, 4 }
  0xb3   : > { %v579_v41 = vadd.f32 %v578_v39, %v576_v37  ;;  %v585_v42 = vadd.f32 %v584_v40, %v577_v38 }
  0xb5   : > { %v580_v43 = vrot.slane %v579_v41, 2  ;;  %v586_v21 = vrot.slane %v585_v42, 2 }
  0xb7   : > { %v581_v45 = vadd.f32 %v580_v43, %v579_v41  ;;  %v587_v46 = vadd.f32 %v586_v21, %v585_v42 }
  0xb9   : > { %v582_v47 = vrot.slane %v581_v45, 1  ;;  %v588_v48 = vrot.slane %v587_v46, 1 }
  0xbb   : > { %v583_v50 = vadd.f32 %v582_v47, %v581_v45  ;;  %v589_v51 = vadd.f32 %v588_v48, %v587_v46 }
  0xbd   : > { %v600_v52 = vadd.f32 %v599_v49, %v583_v50  ;;  %v601_v53 = vadd.f32 %v599_v49, %v589_v51 }
  0xbf   : > { %v741_v54 = vmul.f32 -1.442695, %v600_v52  ;;  %v742_v55 = vmul.f32 -1.442695, %v601_v53 }
  0xc1   : > { %820 = vpow2.f32 %v741_v54 }
  0xc2   : > { %822 = vpow2.f32 %v742_v55 }
  0xce   : > { %v821_v56 = vpop.eup %820 }
  0xcf   : > { %v823_v57 = vpop.eup %822  ;;  %v608_v58 = vadd.f32 1.0, %v821_v56 }
  0xd0   : > { %v609_v59 = vadd.f32 1.0, %v823_v57 }
  0xd1   : > { %824 = vrcp.f32 %v608_v58 }
  0xd2   : > { %826 = vrcp.f32 %v609_v59 }
  0xde   : > { %v825_v60 = vpop.eup %824 }
  0xdf   : > { %v827_v12 = vpop.eup %826 }
  0xe0   : > { %v616_v61 = vcombine.low %v825_v60, %v827_v12 }
  0xe2   : > { %v618_v62 = vmul.f32 %v616_v61, %v1052_v30 }
  0xe4   : > { %619 = vst [vmem:[%s324_s21] sm:$0xff] %v618_v62 }
  0xe5   : > { %841 = shalt.err (!%p838_p5)
}
  0xe6   : > { %s842_s16 = scalar_lea.hbm %s635_s25, 128  ;;  %s846_s19 = scalar_lea.hbm %s1129_s7, 256 }
  0xe7   : > { %p843_p6 = scmp.ne.s32.totalorder %s635_s25, %s842_s16  ;;  %p847_p10 = scmp.lt.s32.totalorder %s635_s25, %s1129_s7 }
  0xe8   : > { %p848_p11 = scmp.lt.s32.totalorder %s846_s19, %s842_s16 }
  0xe9   : > { %p844_p7 = pnand %p843_p6, %p994_p4 }
  0xea   : > { %p849_p12 = por %p848_p11, %p847_p10 }
  0xeb   : > { %p845_p9 = pneg %p844_p7 }
  0xed   : > { %p850_p13 = pnand %p849_p12, %p845_p9 }
  0xef   : > { %853 = shalt.err (!%p850_p13)
}
  0xf0   : > { %751 = dma.vmem_to_hbm [thread:$0]  (%p994_p4), %s638_s22, 128, %s635_s25, %s621_s6  }
  0xf1 PF: > { %p757_p0 = scmp.ge.s32.totalorder %s904_s8, 2  ;;  %s649_s23 = sand.u32 1, %s884_s26  }
  0xf2   : > { %s650_s24 = scalar_lea.sflag [#allocation4], %s649_s23 }
  0xf3   : > { %p754_p1 = pnand %p757_p0, %p1001_p8 }
  0xf5   : > { %p755_p2 = pneg %p754_p1 }
  0xf7   : > { %879 = dma.done.wait (%p755_p2), %s650_s24, 128  }
  0xf8   : > { %881 = vsyncadd (%p755_p2), %s650_s24, 4294967168  ;;  %s22_s8 = sadd.s32 1, %s904_s8   ;;  %s1132_s26 = smov %s888_s27 }
  0xf9   : > { %p19_p3 = scmp.ge.s32.totalorder %s22_s8, 4   ;;  %s1133_s27 = smov %s892_s28 }
  0xfa   : > { %s1134_s28 = smov %s1007_s15  ;;  %s1135_s29 = smov %s900_s30 }
  0xfb   : > { %s1136_s30 = smov %s1138_s10  ;;  %21 = sbr.rel (!%p19_p3) target bundleno = 7 (0x7), region = 86 }
 0x100   :  { %655 = vsyncpa [#allocation4], 1 }
 0x101   :  { %657 = vsyncpa [#allocation4 + $0x1], 1 }

</bundles_post_ra>
